<compile_context>
chip_gen: v5e
topology: v5e:2x2
jax: 0.10.0
libtpu: 0.0.40
codegen_flags: <defaults>
</compile_context>

<pallas_src>
import jax
import jax.numpy as jnp
from jax import lax
from jax.experimental import pallas as pl
from jax.experimental.pallas import tpu as pltpu


def _round_up(n, m):
    return ((n + m - 1) // m) * m


def logreg_kernel(x_ref, wt_ref, b_ref, o_ref):
    """o = sigmoid(w . x_row + b), emitted as a lane-dense (1, TB) row.

    x_ref:  (TB, F) VMEM (input dtype)
    wt_ref: (1, F)  VMEM (same dtype as x)
    b_ref:  (1, 1)  SMEM scalar bias (f32)
    o_ref:  (1, TB) VMEM f32
    """
    # (1,F) contracted with (TB,F) over F on the otherwise-idle MXU -> (1, TB).
    z = lax.dot_general(
        wt_ref[...], x_ref[...],
        dimension_numbers=(((1,), (1,)), ((), ())),
        preferred_element_type=jnp.float32,
    )
    # Accurate, numerically stable sigmoid; EUP has plenty of slack.
    o_ref[...] = jax.nn.sigmoid(z + b_ref[0, 0])


def _vmem_budget_bytes():
    """Return (per_x_buffer_budget, vmem_limit) gated on the chip generation."""
    vmem_cap = None
    try:
        info = pltpu.get_tpu_info()
        vmem_cap = getattr(info, "vmem_capacity_bytes", None)
    except Exception:
        vmem_cap = None
    if vmem_cap is None:
        vmem_cap = 64 * 1024 * 1024  # conservative (v7x-sized) fallback
    if vmem_cap <= 64 * 1024 * 1024:
        # v7x: 64 MiB physical VMEM per TensorCore.
        return 10 * 1024 * 1024, 52 * 1024 * 1024
    # v5e / v6e: 128 MiB physical VMEM.
    return 20 * 1024 * 1024, 100 * 1024 * 1024


def _choose_block_b(B, F, itemsize, budget_bytes):
    # Byte-based tile sizing that accounts for (8,128) lane padding: a (tb, F)
    # block physically occupies tb * round_up(F,128) * itemsize bytes in VMEM.
    lane_f = _round_up(max(F, 1), 128)
    rows = budget_bytes // (lane_f * itemsize)
    rows = max(128, (rows // 128) * 128)      # multiple of 128 -> lane-dense out block
    return min(rows, _round_up(B, 128))


def logistic_regression(x, w, b, *, block_b=None):
    """y = sigmoid(x @ w + b).

    x: (B, F) f32 or bf16 (read as-is; the kernel is HBM-bound on x).
    w: (F, 1) or (F,) weight.   b: bias with a single element.
    Returns (B, 1) f32.
    """
    B, F = x.shape
    wt = jnp.reshape(w, (1, F)).astype(x.dtype)         # resident weight row
    bias = jnp.reshape(b, (1, 1)).astype(jnp.float32)   # scalar bias for SMEM

    per_buf_budget, vmem_limit = _vmem_budget_bytes()
    itemsize = jnp.dtype(x.dtype).itemsize
    if block_b is None:
        tb = _choose_block_b(B, F, itemsize, per_buf_budget)
    else:
        tb = max(128, _round_up(block_b, 128))

    Bp = _round_up(B, tb)
    if Bp != B:
        x = jnp.pad(x, ((0, Bp - B), (0, 0)))           # padding rows sliced off below

    # Make sure the limit covers the double-buffered x tile even for odd shapes.
    tile_bytes = tb * _round_up(max(F, 1), 128) * itemsize
    vmem_limit = max(vmem_limit, 2 * tile_bytes + (8 << 20))

    out = pl.pallas_call(
        logreg_kernel,
        out_shape=jax.ShapeDtypeStruct((1, Bp), jnp.float32),
        grid_spec=pltpu.PrefetchScalarGridSpec(
            num_scalar_prefetch=0,
            grid=(Bp // tb,),
            in_specs=[
                pl.BlockSpec((tb, F), lambda i: (i, 0)),            # batch-tiled, pipelined
                pl.BlockSpec((1, F), lambda i: (0, 0)),             # weight row stays resident
                pl.BlockSpec(memory_space=pltpu.MemorySpace.SMEM),  # scalar bias in SMEM
            ],
            out_specs=pl.BlockSpec((1, tb), lambda i: (0, i)),      # lane-dense output row
        ),
        compiler_params=pltpu.CompilerParams(
            # Megacore-shards batch tiles where supported; no-op on single-TC chips.
            dimension_semantics=("parallel",),
            vmem_limit_bytes=vmem_limit,
        ),
    )(x, wt, bias)
    return jnp.reshape(out, (Bp, 1))[:B]


if __name__ == "__main__":
    # Small shapes consistent with the module: batch=8, n_inp_features=32.
    batch, n_feat = 8, 32

    key = jax.random.PRNGKey(0)
    kx, kw, kb = jax.random.split(key, 3)

    x = jax.random.normal(kx, (batch, n_feat), dtype=jnp.float32)

    # Deterministic parameter init matching nn.Linear's U(-1/sqrt(F), 1/sqrt(F)).
    bound = 1.0 / float(n_feat) ** 0.5
    w = jax.random.uniform(kw, (n_feat, 1), dtype=jnp.float32,
                           minval=-bound, maxval=bound)
    b = jax.random.uniform(kb, (1, 1), dtype=jnp.float32,
                           minval=-bound, maxval=bound)

    out = jax.block_until_ready(logistic_regression(x, w, b))
    ref = jax.nn.sigmoid(x @ w + b)
    assert out.shape == (batch, 1)
    assert jnp.allclose(out, ref, atol=1e-4, rtol=1e-4), \
        float(jnp.max(jnp.abs(out - ref)))

    # Non-multiple-of-tile batch with a forced small tile exercises the
    # multi-tile grid, padding, and lane-dense multi-block output path.
    batch2 = 300
    x2 = jax.random.normal(jax.random.PRNGKey(1), (batch2, n_feat), dtype=jnp.float32)
    out2 = jax.block_until_ready(logistic_regression(x2, w, b, block_b=128))
    ref2 = jax.nn.sigmoid(x2 @ w + b)
    assert out2.shape == (batch2, 1)
    assert jnp.allclose(out2, ref2, atol=1e-4, rtol=1e-4), \
        float(jnp.max(jnp.abs(out2 - ref2)))

    # bf16 input path (half the HBM bytes for this bandwidth-bound kernel).
    x3 = x2.astype(jnp.bfloat16)
    out3 = jax.block_until_ready(logistic_regression(x3, w, b))
    ref3 = jax.nn.sigmoid(x3.astype(jnp.float32) @ w + b)
    assert out3.shape == (batch2, 1)
    assert jnp.allclose(out3, ref3, atol=2e-2, rtol=2e-2), \
        float(jnp.max(jnp.abs(out3 - ref3)))

    print("KERNEL_OK")
</pallas_src>

<mosaic_0001>
module attributes {stable_mosaic.version = 11 : i64} {
  func.func @logreg_kernel(%arg0: i32, %arg1: memref<128x32xf32, #tpu.memory_space<vmem>>, %arg2: memref<1x32xf32, #tpu.memory_space<vmem>>, %arg3: memref<1x1xf32, #tpu.memory_space<smem>>, %arg4: memref<1x128xf32, #tpu.memory_space<vmem>>) attributes {dimension_semantics = [#tpu.dimension_semantics<parallel>], iteration_bounds = array<i64: 1>, scalar_prefetch = 0 : i64, scratch_operands = 0 : i64, tpu.core_type = #tpu.core_type<tc>, window_params = [{transform_indices = @transform_0, window_bounds = array<i64: 128, 32>}, {pipeline_mode = #tpu.pipeline_mode<synchronous>, transform_indices = @transform_1, window_bounds = array<i64: 1, 32>}, {transform_indices = @transform_2, window_bounds = array<i64: 1, 1>}, {transform_indices = @transform_3, window_bounds = array<i64: 1, 128>}]} {
    %c0 = arith.constant 0 : index
    %c0_0 = arith.constant 0 : index
    %0 = vector.load %arg2[%c0, %c0_0] : memref<1x32xf32, #tpu.memory_space<vmem>>, vector<1x32xf32>
    %c0_1 = arith.constant 0 : index
    %c0_2 = arith.constant 0 : index
    %1 = vector.load %arg1[%c0_1, %c0_2] : memref<128x32xf32, #tpu.memory_space<vmem>>, vector<128x32xf32>
    %cst = arith.constant dense<0.000000e+00> : vector<1x128xf32>
    %2 = tpu.matmul %0, %1, %cst {dimension_numbers = #tpu.dot_dimension_numbers<[1], [1], [0], [0], [0, 0, 1, 0], [], []>} : vector<1x32xf32>, vector<128x32xf32>, vector<1x128xf32> -> vector<1x128xf32>
    %c0_3 = arith.constant 0 : index
    %c0_4 = arith.constant 0 : index
    %3 = memref.load %arg3[%c0_3, %c0_4] : memref<1x1xf32, #tpu.memory_space<smem>>
    %4 = vector.broadcast %3 : f32 to vector<1x128xf32>
    %5 = arith.addf %2, %4 : vector<1x128xf32>
    %6 = arith.negf %5 : vector<1x128xf32>
    %7 = math.exp %6 : vector<1x128xf32>
    %cst_5 = arith.constant 1.000000e+00 : f32
    %8 = vector.broadcast %cst_5 : f32 to vector<1x128xf32>
    %9 = arith.addf %8, %7 : vector<1x128xf32>
    %10 = arith.divf %8, %9 : vector<1x128xf32>
    %c0_6 = arith.constant 0 : index
    %c0_7 = arith.constant 0 : index
    %11 = vector.load %arg4[%c0_6, %c0_7] : memref<1x128xf32, #tpu.memory_space<vmem>>, vector<1x128xf32>
    tpu.vector_store %arg4[%c0_6, %c0_7], %10 {strides = array<i32>} : memref<1x128xf32, #tpu.memory_space<vmem>>, vector<1x128xf32>,
    return
  }
  func.func @transform_0(%arg0: i32) -> (i32, i32) {
    %c0_i32 = arith.constant 0 : i32
    %c0_i32_0 = arith.constant 0 : i32
    return %arg0, %c0_i32 : i32, i32
  }
  func.func @transform_1(%arg0: i32) -> (i32, i32) {
    %c0_i32 = arith.constant 0 : i32
    %c0_i32_0 = arith.constant 0 : i32
    %c0_i32_1 = arith.constant 0 : i32
    return %c0_i32, %c0_i32_0 : i32, i32
  }
  func.func @transform_2(%arg0: i32) -> (i32, i32) {
    %c0_i32 = arith.constant 0 : i32
    %c0_i32_0 = arith.constant 0 : i32
    %c0_i32_1 = arith.constant 0 : i32
    return %c0_i32, %c0_i32_0 : i32, i32
  }
  func.func @transform_3(%arg0: i32) -> (i32, i32) {
    %c0_i32 = arith.constant 0 : i32
    %c0_i32_0 = arith.constant 0 : i32
    return %c0_i32, %arg0 : i32, i32
  }
}

</mosaic_0001>

<bundles_post_ra>
// kernel: tpu_custom_call.1
= control target key start
LH: loop header
LB: loop body
LE: loop exit
PB: predicated region body
PF: predicated region fallthrough
CT: control target
= control target key end

     0   :  { %vm35_vm0 = vcmask 261120   ;;  %s287_s0 = inlined_call_operand.vmem [shape: f32[128,32], index: 0, kind: input, shape index: {}]   ;;  %s288_s1 = inlined_call_operand.vmem [shape: f32[1,32], index: 1, kind: input, shape index: {}]   ;;  %s289_s2 = inlined_call_operand.<no memory space> [shape: f32[1,1], index: 2, kind: input, shape index: {}]   ;;  %s290_s3 = inlined_call_operand.hbm [shape: f32[1,128], index: 3, kind: output, shape index: {}]  }
   0x1   :  { %v32_v0 = vld [vmem:[%s287_s0 + $0x78] sm:$0xff]  ;;  %v31_v1 = vld [vmem:[%s287_s0 + $0x70] sm:$0xff] }
   0x2   :  { %143 = vmatpush.xpose.msk.msra.mxu0 %vm35_vm0, %v32_v0 }
   0x3   :  { %9 = vsyncpa [#allocation4], 0  ;;  %v30_v2 = vld [vmem:[%s287_s0 + $0x68] sm:$0xff]  ;;  %v29_v3 = vld [vmem:[%s287_s0 + $0x60] sm:$0xff]  ;;  %v34_v17 = vstv %s289_s2  ;;  %s134_s2 = sshll.u32 %s290_s3, 4  ;;  %s135_s2 = int_to_ptr.hbm [resolvable:$true] %s134_s2 }
   0x4   :  { %v28_v4 = vld [vmem:[%s287_s0 + $0x58] sm:$0xff]  ;;  %v27_v5 = vld [vmem:[%s287_s0 + $0x50] sm:$0xff]  ;;  %v26_v6 = vld [vmem:[%s287_s0 + $0x48] sm:$0xff] }
   0x5   :  { %v25_v7 = vld [vmem:[%s287_s0 + $0x40] sm:$0xff]  ;;  %v24_v8 = vld [vmem:[%s287_s0 + $0x38] sm:$0xff]  ;;  %v23_v9 = vld [vmem:[%s287_s0 + $0x30] sm:$0xff] }
   0x6   :  { %144 = vmatpush.xpose.msk.msra.mxu0 %vm35_vm0, %v31_v1  ;;  %v22_v10 = vld [vmem:[%s287_s0 + $0x28] sm:$0xff]  ;;  %v21_v11 = vld [vmem:[%s287_s0 + $0x20] sm:$0xff]  ;;  %v20_v12 = vld [vmem:[%s287_s0 + $0x18] sm:$0xff] }
   0x7   :  { %v19_v13 = vld [vmem:[%s287_s0 + $0x10] sm:$0xff]  ;;  %v18_v14 = vld [vmem:[%s287_s0 + $0x8] sm:$0xff]  ;;  %v17_v15 = vld [vmem:[%s287_s0] sm:$0xff]  ;;  %s192_s0 = smov [#allocation3]  }
   0x8   :  { %v16_v16 = vld [vmem:[%s288_s1] sm:$0x1]  ;;  %s132_s1 = sshll.u32 %s192_s0, 4  ;;  %s133_s1 = int_to_ptr.vmem [resolvable:$true] %s132_s1 }
   0xa   :  { %145 = vmatpush.xpose.msk.msra.mxu0 %vm35_vm0, %v30_v2 }
   0xe   :  { %146 = vmatpush.xpose.msk.msra.mxu0 %vm35_vm0, %v29_v3 }
  0x12   :  { %147 = vmatpush.xpose.msk.msra.mxu0 %vm35_vm0, %v28_v4 }
  0x16   :  { %148 = vmatpush.xpose.msk.msra.mxu0 %vm35_vm0, %v27_v5 }
  0x1a   :  { %149 = vmatpush.xpose.msk.msra.mxu0 %vm35_vm0, %v26_v6 }
  0x1e   :  { %150 = vmatpush.xpose.msk.msra.mxu0 %vm35_vm0, %v25_v7 }
  0x22   :  { %151 = vmatpush.xpose.msk.msra.mxu0 %vm35_vm0, %v24_v8 }
  0x26   :  { %152 = vmatpush.xpose.msk.msra.mxu0 %vm35_vm0, %v23_v9 }
  0x2a   :  { %153 = vmatpush.xpose.msk.msra.mxu0 %vm35_vm0, %v22_v10 }
  0x2e   :  { %154 = vmatpush.xpose.msk.msra.mxu0 %vm35_vm0, %v21_v11 }
  0x32   :  { %155 = vmatpush.xpose.msk.msra.mxu0 %vm35_vm0, %v20_v12 }
  0x36   :  { %156 = vmatpush.xpose.msk.msra.mxu0 %vm35_vm0, %v19_v13 }
  0x3a   :  { %157 = vmatpush.xpose.msk.msra.mxu0 %vm35_vm0, %v18_v14 }
  0x3e   :  { %158 = vmatpush.xpose.msk.msra.mxu0 %vm35_vm0, %v17_v15 }
  0x41   :  { %159 = vmatmul.msk.f32.vlgmr.msra.gmra.mxu0 %vm35_vm0, %v16_v16 }
  0xbe   :  { %v104_v18 = vpop.f32.mrf.mxu0 }
  0xbf   :  { %v105_v19 = vadd.f32 %v104_v18, %v34_v17 }
  0xc1   :  { %v160_v20 = vmul.f32 -1.442695, %v105_v19 }
  0xc3   :  { %162 = vpow2.f32 %v160_v20 }
  0xc9   :  { %v163_v21 = vpop.eup %162 }
  0xca   :  { %v110_v22 = vadd.f32 1.0, %v163_v21 }
  0xcc   :  { %164 = vrcp.f32 %v110_v22  ;;  %v122_v26 = vand.u32 2147483648, %v110_v22  ;;  %v120_v28 = vand.u32 2147483647, %v110_v22  ;;  %vm116_vm2 = vweird.f32 %v110_v22 }
  0xce   :  { %v123_v30 = vor.u32 1.1754944e-38, %v122_v26  ;;  %vm121_vm4 = vcmp.eq.f32.partialorder %v120_v28, 8.507059e+37 }
  0xd2   :  { %v165_v23 = vpop.eup %164 }
  0xd3   :  { %v112_v24 = vmul.f32 %v165_v23, %v110_v22  ;;  %vm117_vm1 = vweird.f32 %v165_v23 }
  0xd4   :  { %vm118_vm3 = vmor %vm116_vm2, %vm117_vm1 }
  0xd5   :  { %v113_v25 = vsub.f32 1.0, %v112_v24 }
  0xd7   :  { %v114_v27 = vmul.f32 %v165_v23, %v113_v25 }
  0xd9   :  { %v115_v29 = vadd.f32 %v165_v23, %v114_v27 }
  0xdb   :  { %v119_v31 = vsel %vm118_vm3, %v165_v23, %v115_v29 }
  0xdc   :  { %v124_v32 = vsel %vm121_vm4, %v123_v30, %v119_v31 }
  0xdd   :  { %126 = vst [vmem:[#allocation3] sm:$0x1] %v124_v32 }
  0xde   :  { %137 = dma.vmem_to_hbm [thread:$0]  %s133_s1, 16, %s135_s2, [#allocation4]  }
  0xdf   :  { %190 = dma.done.wait [#allocation4], 16  }
  0xe0   :  { %191 = vsyncadd [#allocation4], 4294967280 }
  0xe1   :  { %142 = vsyncpa [#allocation4], 1 }

</bundles_post_ra>
